<compile_context>
chip_gen: v5e
topology: v5e:2x2
jax: 0.10.0
libtpu: 0.0.40
codegen_flags: <defaults>
</compile_context>

<pallas_src>
import functools

import jax
import jax.numpy as jnp
from jax.experimental import pallas as pl
from jax.experimental.pallas import tpu as pltpu


# ---------------------------------------------------------------------------
# Fused kernel: all four losses + weighted total in one invocation.
# ---------------------------------------------------------------------------
def _fused_loss_kernel(det_o_ref, det_t_ref,      # lane-dense (Rd, 128) slabs
                       logits_ref,                # (B, C) contrastive logits
                       cls_ref,                   # (B,) int32 class targets in SMEM
                       tmp_o_ref, tmp_t_ref,      # lane-dense (Rt, 128) slabs
                       conf_p_ref, conf_t_ref,    # (B, N) probs / targets
                       w_ref,                     # (4,) f32 weights in SMEM
                       o_ref,                     # (8,) f32 SMEM output
                       *, det_n, tmp_n, B, C):
    f32 = jnp.float32

    # ----- detection MSE (padding contributes exactly 0 to the sum) -----
    dd = det_o_ref[...].astype(f32) - det_t_ref[...].astype(f32)
    loss_det = jnp.sum(dd * dd) / f32(det_n)

    # ----- temporal MSE -----
    dt = tmp_o_ref[...].astype(f32) - tmp_t_ref[...].astype(f32)
    loss_tmp = jnp.sum(dt * dt) / f32(tmp_n)

    # ----- contrastive cross-entropy (class indices read from SMEM) -----
    # NOTE: class indices are assumed to satisfy 0 <= tgt < C (out-of-range indices
    # silently contribute a 0 target-logit, matching no-error best-effort behavior).
    logits = logits_ref[...].astype(f32)                    # (B, C)
    cls_iota = jax.lax.broadcasted_iota(jnp.int32, (1, C), 1)
    ce_sum = jnp.zeros((1, 1), f32)
    for b in range(B):                                      # B is small & static
        row = logits[b:b + 1, :]                            # (1, C)
        m = jnp.max(row, axis=-1, keepdims=True)            # (1, 1)
        lse = jnp.log(jnp.sum(jnp.exp(row - m), axis=-1, keepdims=True)) + m
        tgt = cls_ref[b]                                    # scalar int32 from SMEM
        tgt_logit = jnp.sum(jnp.where(cls_iota == tgt, row, 0.0),
                            axis=-1, keepdims=True)         # (1, 1)
        ce_sum = ce_sum + (lse - tgt_logit)
    loss_ce = ce_sum[0, 0] / f32(B)

    # ----- confidence BCE (PyTorch BCELoss clamps logs at -100) -----
    p = conf_p_ref[...].astype(f32)
    t = conf_t_ref[...].astype(f32)
    log_p = jnp.maximum(jnp.log(p), -100.0)
    log_1mp = jnp.maximum(jnp.log1p(-p), -100.0)
    loss_bce = jnp.sum(-(t * log_p + (1.0 - t) * log_1mp)) / f32(p.size)

    # ----- weighted total (weights from SMEM) -----
    total = (w_ref[0] * loss_det + w_ref[1] * loss_ce
             + w_ref[2] * loss_tmp + w_ref[3] * loss_bce)

    o_ref[0] = loss_det
    o_ref[1] = loss_ce
    o_ref[2] = loss_tmp
    o_ref[3] = loss_bce
    o_ref[4] = total
    o_ref[5] = f32(0.0)
    o_ref[6] = f32(0.0)
    o_ref[7] = f32(0.0)


# ---------------------------------------------------------------------------
# Layout helpers (pure plumbing, keep native dtype)
# ---------------------------------------------------------------------------
def _pad_lane_dense(x):
    """Flatten row-major, zero-pad to a multiple of 8*128, reshape to (-1, 128).

    Returns (slab, true_element_count)."""
    flat = x.reshape(-1)
    n = flat.shape[0]
    pad = (-n) % (8 * 128)
    if pad:
        flat = jnp.pad(flat, (0, pad))
    return flat.reshape(-1, 128), n


# ---------------------------------------------------------------------------
# Module
# ---------------------------------------------------------------------------
class MultiTaskLoss:
    def __init__(self, weights=None):
        w = weights if weights is not None else [1.0, 0.1, 0.2, 0.05]
        self.weights = jnp.asarray(w, jnp.float32)

    def __call__(self, detection_output, detection_target,
                 contrastive_output, contrastive_target,
                 temporal_output, temporal_target,
                 confidence_output, confidence_target):
        det_o, det_n = _pad_lane_dense(detection_output)
        det_t, _ = _pad_lane_dense(detection_target)
        tmp_o, tmp_n = _pad_lane_dense(temporal_output)
        tmp_t, _ = _pad_lane_dense(temporal_target)

        B, C = contrastive_output.shape
        cls_tgt = contrastive_target.astype(jnp.int32).reshape(B)

        conf_p = confidence_output.reshape(confidence_output.shape[0], -1)
        conf_t = confidence_target.reshape(confidence_target.shape[0], -1)

        kernel = functools.partial(_fused_loss_kernel,
                                   det_n=det_n, tmp_n=tmp_n, B=B, C=C)

        out = pl.pallas_call(
            kernel,
            out_shape=jax.ShapeDtypeStruct((8,), jnp.float32),
            in_specs=[
                pl.BlockSpec(memory_space=pltpu.VMEM),   # detection output slab
                pl.BlockSpec(memory_space=pltpu.VMEM),   # detection target slab
                pl.BlockSpec(memory_space=pltpu.VMEM),   # contrastive logits
                pl.BlockSpec(memory_space=pltpu.SMEM),   # class-index targets
                pl.BlockSpec(memory_space=pltpu.VMEM),   # temporal output slab
                pl.BlockSpec(memory_space=pltpu.VMEM),   # temporal target slab
                pl.BlockSpec(memory_space=pltpu.VMEM),   # confidence probs
                pl.BlockSpec(memory_space=pltpu.VMEM),   # confidence targets
                pl.BlockSpec(memory_space=pltpu.SMEM),   # loss weights
            ],
            out_specs=pl.BlockSpec(memory_space=pltpu.SMEM),
        )(det_o, det_t, contrastive_output, cls_tgt,
          tmp_o, tmp_t, conf_p, conf_t, self.weights)

        stats = {
            "detection_loss": out[0],
            "contrastive_loss": out[1],
            "temporal_loss": out[2],
            "confidence_loss": out[3],
        }
        return out[4], stats


# ---------------------------------------------------------------------------
# Main
# ---------------------------------------------------------------------------
if __name__ == "__main__":
    key = jax.random.PRNGKey(0)
    ks = jax.random.split(key, 8)

    B, C, H, W = 2, 4, 16, 16     # detection maps (NCHW-equivalent)
    NCLS = 10                     # contrastive classes
    T, D = 8, 32                  # temporal sequence
    NCONF = 8                     # confidence scores per sample

    detection_output = jax.random.normal(ks[0], (B, C, H, W), jnp.float32)
    detection_target = jax.random.normal(ks[1], (B, C, H, W), jnp.float32)

    contrastive_output = jax.random.normal(ks[2], (B, NCLS), jnp.float32)
    contrastive_target = jax.random.randint(ks[3], (B,), 0, NCLS, jnp.int32)

    temporal_output = jax.random.normal(ks[4], (B, T, D), jnp.float32)
    temporal_target = jax.random.normal(ks[5], (B, T, D), jnp.float32)

    confidence_output = jax.nn.sigmoid(jax.random.normal(ks[6], (B, NCONF), jnp.float32))
    confidence_target = jax.random.bernoulli(ks[7], 0.5, (B, NCONF)).astype(jnp.float32)

    loss_fn = MultiTaskLoss()
    total, stats = loss_fn(detection_output, detection_target,
                           contrastive_output, contrastive_target,
                           temporal_output, temporal_target,
                           confidence_output, confidence_target)
    total = jax.block_until_ready(total)

    # Pure-JAX reference check
    ref_det = jnp.mean((detection_output - detection_target) ** 2)
    ref_ce = jnp.mean(
        jax.nn.logsumexp(contrastive_output, axis=-1)
        - jnp.take_along_axis(contrastive_output, contrastive_target[:, None], axis=-1)[:, 0]
    )
    ref_tmp = jnp.mean((temporal_output - temporal_target) ** 2)
    ref_bce = jnp.mean(
        -(confidence_target * jnp.log(confidence_output)
          + (1.0 - confidence_target) * jnp.log1p(-confidence_output))
    )
    ref_total = 1.0 * ref_det + 0.1 * ref_ce + 0.2 * ref_tmp + 0.05 * ref_bce

    assert jnp.allclose(stats["detection_loss"], ref_det, rtol=1e-5, atol=1e-5)
    assert jnp.allclose(stats["contrastive_loss"], ref_ce, rtol=1e-5, atol=1e-5)
    assert jnp.allclose(stats["temporal_loss"], ref_tmp, rtol=1e-5, atol=1e-5)
    assert jnp.allclose(stats["confidence_loss"], ref_bce, rtol=1e-5, atol=1e-5)
    assert jnp.allclose(total, ref_total, rtol=1e-5, atol=1e-5), (total, ref_total)

    print("KERNEL_OK")
</pallas_src>

<mosaic_0001>
module attributes {stable_mosaic.version = 11 : i64} {
  func.func @_fused_loss_kernel(%arg0: memref<16x128xf32, #tpu.memory_space<vmem>>, %arg1: memref<16x128xf32, #tpu.memory_space<vmem>>, %arg2: memref<2x10xf32, #tpu.memory_space<vmem>>, %arg3: memref<2xi32, #tpu.memory_space<smem>>, %arg4: memref<8x128xf32, #tpu.memory_space<vmem>>, %arg5: memref<8x128xf32, #tpu.memory_space<vmem>>, %arg6: memref<2x8xf32, #tpu.memory_space<vmem>>, %arg7: memref<2x8xf32, #tpu.memory_space<vmem>>, %arg8: memref<4xf32, #tpu.memory_space<smem>>, %arg9: memref<8xf32, #tpu.memory_space<smem>>) attributes {dimension_semantics = [], scalar_prefetch = 0 : i64, scratch_operands = 0 : i64, tpu.core_type = #tpu.core_type<tc>} {
    %c0 = arith.constant 0 : index
    %c0_0 = arith.constant 0 : index
    %0 = vector.load %arg0[%c0, %c0_0] : memref<16x128xf32, #tpu.memory_space<vmem>>, vector<16x128xf32>
    %c0_1 = arith.constant 0 : index
    %c0_2 = arith.constant 0 : index
    %1 = vector.load %arg1[%c0_1, %c0_2] : memref<16x128xf32, #tpu.memory_space<vmem>>, vector<16x128xf32>
    %2 = arith.subf %0, %1 : vector<16x128xf32>
    %3 = arith.mulf %2, %2 : vector<16x128xf32>
    %4 = vector.shape_cast %3 : vector<16x128xf32> to vector<1x16x128xf32>
    %cst = arith.constant dense<0.000000e+00> : vector<1xf32>
    %5 = vector.multi_reduction <add>, %4, %cst [1, 2] : vector<1x16x128xf32> to vector<1xf32>
    %6 = vector.shape_cast %5 : vector<1xf32> to vector<1x1x1xf32>
    %7 = vector.extract %6[0, 0, 0] : f32 from vector<1x1x1xf32>
    %cst_3 = arith.constant 2.048000e+03 : f32
    %8 = arith.divf %7, %cst_3 : f32
    %c0_4 = arith.constant 0 : index
    %c0_5 = arith.constant 0 : index
    %9 = vector.load %arg4[%c0_4, %c0_5] : memref<8x128xf32, #tpu.memory_space<vmem>>, vector<8x128xf32>
    %c0_6 = arith.constant 0 : index
    %c0_7 = arith.constant 0 : index
    %10 = vector.load %arg5[%c0_6, %c0_7] : memref<8x128xf32, #tpu.memory_space<vmem>>, vector<8x128xf32>
    %11 = arith.subf %9, %10 : vector<8x128xf32>
    %12 = arith.mulf %11, %11 : vector<8x128xf32>
    %13 = vector.shape_cast %12 : vector<8x128xf32> to vector<1x8x128xf32>
    %cst_8 = arith.constant dense<0.000000e+00> : vector<1xf32>
    %14 = vector.multi_reduction <add>, %13, %cst_8 [1, 2] : vector<1x8x128xf32> to vector<1xf32>
    %15 = vector.shape_cast %14 : vector<1xf32> to vector<1x1x1xf32>
    %16 = vector.extract %15[0, 0, 0] : f32 from vector<1x1x1xf32>
    %cst_9 = arith.constant 5.120000e+02 : f32
    %17 = arith.divf %16, %cst_9 : f32
    %c0_10 = arith.constant 0 : index
    %c0_11 = arith.constant 0 : index
    %18 = vector.load %arg2[%c0_10, %c0_11] : memref<2x10xf32, #tpu.memory_space<vmem>>, vector<2x10xf32>
    %19 = tpu.iota {dimensions = array<i32: 1>} : vector<1x10xi32>
    %cst_12 = arith.constant 0.000000e+00 : f32
    %20 = vector.broadcast %cst_12 : f32 to vector<1x1xf32>
    %21 = vector.extract_strided_slice %18 {offsets = [0, 0], sizes = [1, 10], strides = [1, 1]} : vector<2x10xf32> to vector<1x10xf32>
    %cst_13 = arith.constant dense<0xFF800000> : vector<1xf32>
    %22 = vector.multi_reduction <maximumf>, %21, %cst_13 [1] : vector<1x10xf32> to vector<1xf32>
    %23 = vector.shape_cast %22 : vector<1xf32> to vector<1x1xf32>
    %24 = vector.broadcast %23 : vector<1x1xf32> to vector<1x10xf32>
    %25 = arith.subf %21, %24 : vector<1x10xf32>
    %26 = math.exp %25 : vector<1x10xf32>
    %cst_14 = arith.constant dense<0.000000e+00> : vector<1xf32>
    %27 = vector.multi_reduction <add>, %26, %cst_14 [1] : vector<1x10xf32> to vector<1xf32>
    %28 = vector.shape_cast %27 : vector<1xf32> to vector<1x1xf32>
    %29 = math.log %28 : vector<1x1xf32>
    %30 = arith.addf %29, %23 : vector<1x1xf32>
    %c0_15 = arith.constant 0 : index
    %31 = memref.load %arg3[%c0_15] : memref<2xi32, #tpu.memory_space<smem>>
    %32 = vector.broadcast %31 : i32 to vector<1x10xi32>
    %33 = arith.cmpi eq, %19, %32 : vector<1x10xi32>
    %cst_16 = arith.constant 0.000000e+00 : f32
    %34 = vector.broadcast %cst_16 : f32 to vector<1x10xf32>
    %35 = arith.select %33, %21, %34 : vector<1x10xi1>, vector<1x10xf32>
    %cst_17 = arith.constant dense<0.000000e+00> : vector<1xf32>
    %36 = vector.multi_reduction <add>, %35, %cst_17 [1] : vector<1x10xf32> to vector<1xf32>
    %37 = vector.shape_cast %36 : vector<1xf32> to vector<1x1xf32>
    %38 = arith.subf %30, %37 : vector<1x1xf32>
    %39 = arith.addf %20, %38 : vector<1x1xf32>
    %40 = vector.extract_strided_slice %18 {offsets = [1, 0], sizes = [1, 10], strides = [1, 1]} : vector<2x10xf32> to vector<1x10xf32>
    %cst_18 = arith.constant dense<0xFF800000> : vector<1xf32>
    %41 = vector.multi_reduction <maximumf>, %40, %cst_18 [1] : vector<1x10xf32> to vector<1xf32>
    %42 = vector.shape_cast %41 : vector<1xf32> to vector<1x1xf32>
    %43 = vector.broadcast %42 : vector<1x1xf32> to vector<1x10xf32>
    %44 = arith.subf %40, %43 : vector<1x10xf32>
    %45 = math.exp %44 : vector<1x10xf32>
    %cst_19 = arith.constant dense<0.000000e+00> : vector<1xf32>
    %46 = vector.multi_reduction <add>, %45, %cst_19 [1] : vector<1x10xf32> to vector<1xf32>
    %47 = vector.shape_cast %46 : vector<1xf32> to vector<1x1xf32>
    %48 = math.log %47 : vector<1x1xf32>
    %49 = arith.addf %48, %42 : vector<1x1xf32>
    %c1 = arith.constant 1 : index
    %50 = memref.load %arg3[%c1] : memref<2xi32, #tpu.memory_space<smem>>
    %51 = vector.broadcast %50 : i32 to vector<1x10xi32>
    %52 = arith.cmpi eq, %19, %51 : vector<1x10xi32>
    %cst_20 = arith.constant 0.000000e+00 : f32
    %53 = vector.broadcast %cst_20 : f32 to vector<1x10xf32>
    %54 = arith.select %52, %40, %53 : vector<1x10xi1>, vector<1x10xf32>
    %cst_21 = arith.constant dense<0.000000e+00> : vector<1xf32>
    %55 = vector.multi_reduction <add>, %54, %cst_21 [1] : vector<1x10xf32> to vector<1xf32>
    %56 = vector.shape_cast %55 : vector<1xf32> to vector<1x1xf32>
    %57 = arith.subf %49, %56 : vector<1x1xf32>
    %58 = arith.addf %39, %57 : vector<1x1xf32>
    %59 = vector.extract %58[0, 0] : f32 from vector<1x1xf32>
    %cst_22 = arith.constant 2.000000e+00 : f32
    %60 = arith.divf %59, %cst_22 : f32
    %c0_23 = arith.constant 0 : index
    %c0_24 = arith.constant 0 : index
    %61 = vector.load %arg6[%c0_23, %c0_24] : memref<2x8xf32, #tpu.memory_space<vmem>>, vector<2x8xf32>
    %c0_25 = arith.constant 0 : index
    %c0_26 = arith.constant 0 : index
    %62 = vector.load %arg7[%c0_25, %c0_26] : memref<2x8xf32, #tpu.memory_space<vmem>>, vector<2x8xf32>
    %63 = math.log %61 : vector<2x8xf32>
    %cst_27 = arith.constant -1.000000e+02 : f32
    %64 = vector.broadcast %cst_27 : f32 to vector<2x8xf32>
    %65 = arith.maximumf %63, %64 : vector<2x8xf32>
    %cst_28 = arith.constant 0.000000e+00 : f32
    %66 = vector.broadcast %cst_28 : f32 to vector<2x8xf32>
    %67 = arith.subf %66, %61 : vector<2x8xf32>
    %68 = math.log1p %67 : vector<2x8xf32>
    %cst_29 = arith.constant -1.000000e+02 : f32
    %69 = vector.broadcast %cst_29 : f32 to vector<2x8xf32>
    %70 = arith.maximumf %68, %69 : vector<2x8xf32>
    %71 = arith.mulf %62, %65 : vector<2x8xf32>
    %cst_30 = arith.constant 1.000000e+00 : f32
    %72 = vector.broadcast %cst_30 : f32 to vector<2x8xf32>
    %73 = arith.subf %72, %62 : vector<2x8xf32>
    %74 = arith.mulf %73, %70 : vector<2x8xf32>
    %75 = arith.addf %71, %74 : vector<2x8xf32>
    %cst_31 = arith.constant 0.000000e+00 : f32
    %76 = vector.broadcast %cst_31 : f32 to vector<2x8xf32>
    %77 = arith.subf %76, %75 : vector<2x8xf32>
    %78 = vector.shape_cast %77 : vector<2x8xf32> to vector<1x2x8xf32>
    %cst_32 = arith.constant dense<0.000000e+00> : vector<1xf32>
    %79 = vector.multi_reduction <add>, %78, %cst_32 [1, 2] : vector<1x2x8xf32> to vector<1xf32>
    %80 = vector.shape_cast %79 : vector<1xf32> to vector<1x1x1xf32>
    %81 = vector.extract %80[0, 0, 0] : f32 from vector<1x1x1xf32>
    %cst_33 = arith.constant 1.600000e+01 : f32
    %82 = arith.divf %81, %cst_33 : f32
    %c0_34 = arith.constant 0 : index
    %83 = memref.load %arg8[%c0_34] : memref<4xf32, #tpu.memory_space<smem>>
    %84 = arith.mulf %83, %8 : f32
    %c1_35 = arith.constant 1 : index
    %85 = memref.load %arg8[%c1_35] : memref<4xf32, #tpu.memory_space<smem>>
    %86 = arith.mulf %85, %60 : f32
    %87 = arith.addf %84, %86 : f32
    %c2 = arith.constant 2 : index
    %88 = memref.load %arg8[%c2] : memref<4xf32, #tpu.memory_space<smem>>
    %89 = arith.mulf %88, %17 : f32
    %90 = arith.addf %87, %89 : f32
    %c3 = arith.constant 3 : index
    %91 = memref.load %arg8[%c3] : memref<4xf32, #tpu.memory_space<smem>>
    %92 = arith.mulf %91, %82 : f32
    %93 = arith.addf %90, %92 : f32
    %c0_36 = arith.constant 0 : index
    %94 = memref.load %arg9[%c0_36] : memref<8xf32, #tpu.memory_space<smem>>
    memref.store %8, %arg9[%c0_36] : memref<8xf32, #tpu.memory_space<smem>>
    %c1_37 = arith.constant 1 : index
    %95 = memref.load %arg9[%c1_37] : memref<8xf32, #tpu.memory_space<smem>>
    memref.store %60, %arg9[%c1_37] : memref<8xf32, #tpu.memory_space<smem>>
    %c2_38 = arith.constant 2 : index
    %96 = memref.load %arg9[%c2_38] : memref<8xf32, #tpu.memory_space<smem>>
    memref.store %17, %arg9[%c2_38] : memref<8xf32, #tpu.memory_space<smem>>
    %c3_39 = arith.constant 3 : index
    %97 = memref.load %arg9[%c3_39] : memref<8xf32, #tpu.memory_space<smem>>
    memref.store %82, %arg9[%c3_39] : memref<8xf32, #tpu.memory_space<smem>>
    %c4 = arith.constant 4 : index
    %98 = memref.load %arg9[%c4] : memref<8xf32, #tpu.memory_space<smem>>
    memref.store %93, %arg9[%c4] : memref<8xf32, #tpu.memory_space<smem>>
    %cst_40 = arith.constant 0.000000e+00 : f32
    %c5 = arith.constant 5 : index
    %99 = memref.load %arg9[%c5] : memref<8xf32, #tpu.memory_space<smem>>
    memref.store %cst_40, %arg9[%c5] : memref<8xf32, #tpu.memory_space<smem>>
    %cst_41 = arith.constant 0.000000e+00 : f32
    %c6 = arith.constant 6 : index
    %100 = memref.load %arg9[%c6] : memref<8xf32, #tpu.memory_space<smem>>
    memref.store %cst_41, %arg9[%c6] : memref<8xf32, #tpu.memory_space<smem>>
    %cst_42 = arith.constant 0.000000e+00 : f32
    %c7 = arith.constant 7 : index
    %101 = memref.load %arg9[%c7] : memref<8xf32, #tpu.memory_space<smem>>
    memref.store %cst_42, %arg9[%c7] : memref<8xf32, #tpu.memory_space<smem>>
    return
  }
}

</mosaic_0001>

<bundles_post_ra>
// kernel: tpu_custom_call.1
= control target key start
LH: loop header
LB: loop body
LE: loop exit
PB: predicated region body
PF: predicated region fallthrough
CT: control target
= control target key end

     0   :  { %14 = vsyncpa [#allocation3], 0  ;;  %s667_s0 = inlined_call_operand.hbm [shape: f32[16,128], index: 0, kind: input, shape index: {}]   ;;  %s668_s1 = inlined_call_operand.hbm [shape: f32[16,128], index: 1, kind: input, shape index: {}]   ;;  %s669_s2 = inlined_call_operand.hbm [shape: f32[2,10], index: 2, kind: input, shape index: {}]   ;;  %s670_s3 = inlined_call_operand.hbm [shape: s32[2], index: 3, kind: input, shape index: {}]   ;;  %s671_s4 = inlined_call_operand.hbm [shape: f32[8,128], index: 4, kind: input, shape index: {}]   ;;  %s672_s5 = inlined_call_operand.hbm [shape: f32[8,128], index: 5, kind: input, shape index: {}]   ;;  %s673_s6 = inlined_call_operand.vmem [shape: f32[2,8], index: 6, kind: input, shape index: {}]   ;;  %s674_s7 = inlined_call_operand.vmem [shape: f32[2,8], index: 7, kind: input, shape index: {}]   ;;  %s675_s8 = inlined_call_operand.vmem [shape: f32[4], index: 8, kind: input, shape index: {}]   ;;  %s676_s9 = inlined_call_operand.hbm [shape: f32[8], index: 9, kind: output, shape index: {}]  }
   0x1   :  { %15 = vsyncpa [#allocation8], 0 }
   0x2   :  { %16 = vsyncpa [#allocation4], 0 }
   0x3   :  { %17 = vsyncpa [#allocation12], 0 }
   0x4   :  { %18 = vsyncpa [#allocation6], 0 }
   0x5   :  { %19 = vsyncpa [#allocation5], 0  ;;  %s37_s11 = sshll.u32 %s668_s1, 4  ;;  %s550_s12 = smov [#allocation7]   ;;  %s38_s11 = int_to_ptr.hbm [resolvable:$true] %s37_s11 }
   0x6   :  { %s39_s13 = sshll.u32 %s550_s12, 4  ;;  %s71_s16 = sshll.u32 %s671_s4, 4  ;;  %s40_s13 = int_to_ptr.vmem [resolvable:$true] %s39_s13  ;;  %s72_s16 = int_to_ptr.hbm [resolvable:$true] %s71_s16 }
   0x7   :  { %s551_s17 = smov 128   ;;  %s552_s18 = smov 8  }
   0x8   :  { %45 = dma.hbm_to_vmem [thread:$0]  %s38_s11, 256, %s40_s13, [#allocation8], %s551_s17, %s551_s17, %s552_s18  }
   0x9   :  { %s553_s19 = smov [#allocation11]   ;;  %s24_s23 = sshll.u32 %s667_s0, 4  ;;  %s25_s23 = int_to_ptr.hbm [resolvable:$true] %s24_s23 }
   0xa   :  { %s73_s20 = sshll.u32 %s553_s19, 4  ;;  %s51_s25 = sshll.u32 %s669_s2, 4  ;;  %s74_s20 = int_to_ptr.vmem [resolvable:$true] %s73_s20  ;;  %s52_s25 = int_to_ptr.hbm [resolvable:$true] %s51_s25 }
   0xb   :  { %76 = dma.hbm_to_vmem [thread:$0]  %s72_s16, 128, %s74_s20, [#allocation12]  }
   0xc   :  { %s554_s26 = smov [#allocation2]   ;;  %s555_s4 = smov [#allocation9]  }
   0xd   :  { %s26_s27 = sshll.u32 %s554_s26, 4  ;;  %s53_s28 = sshll.u32 %s555_s4, 4  ;;  %s27_s27 = int_to_ptr.vmem [resolvable:$true] %s26_s27  ;;  %s54_s28 = int_to_ptr.vmem [resolvable:$true] %s53_s28 }
   0xe   :  { %32 = dma.hbm_to_vmem [thread:$0]  %s25_s23, 256, %s27_s27, [#allocation3], %s551_s17, %s551_s17, %s552_s18  }
   0xf   :  { %s62_s10 = sshll.u32 %s670_s3, 4  ;;  %s82_s12 = sshll.u32 %s672_s5, 4  ;;  %s63_s10 = int_to_ptr.hbm [resolvable:$true] %s62_s10  ;;  %s83_s12 = int_to_ptr.hbm [resolvable:$true] %s82_s12 }
  0x10   :  { %56 = dma.hbm_to_vmem [thread:$0]  %s52_s25, 32, %s54_s28, [#allocation8]  }
  0x11   :  { %s556_s13 = smov [#allocation10]   ;;  %s557_s2 = smov [#allocation13]  }
  0x12   :  { %65 = dma.hbm_to_smem %s63_s10, 16, %s556_s13, [#allocation4]  }
  0x13   :  { %s84_s14 = sshll.u32 %s557_s2, 4  ;;  %s97_s17 = sshll.u32 %s675_s8, 4  ;;  %s85_s14 = int_to_ptr.vmem [resolvable:$true] %s84_s14  ;;  %s98_s17 = int_to_ptr.vmem [resolvable:$true] %s97_s17 }
  0x14   :  { %87 = dma.hbm_to_vmem [thread:$0]  %s83_s12, 128, %s85_s14, [#allocation12]  }
  0x15   :  { %s558_s3 = smov [#allocation14]  }
  0x16   :  { %100 = dma.vmem_to_smem %s98_s17, 16, %s558_s3, [#allocation6]  }
  0x17   :  { %538 = dma.done.wait [#allocation3], 256  }
  0x18   :  { %539 = vsyncadd [#allocation3], 4294967040 }
  0x19   :  { %540 = dma.done.wait [#allocation8], 288  }
  0x1a   :  { %541 = vsyncadd [#allocation8], 4294967008 }
  0x1b   :  { %542 = dma.done.wait [#allocation4], 16  }
  0x1c   :  { %543 = vsyncadd [#allocation4], 4294967280 }
  0x1d   :  { %544 = dma.done.wait [#allocation12], 256  }
  0x1e   :  { %545 = vsyncadd [#allocation12], 4294967040 }
  0x1f   :  { %546 = dma.done.wait [#allocation6], 16  }
  0x20   :  { %547 = vsyncadd [#allocation6], 4294967280 }
  0x21   :  { %129 = sfence }
  0x22   :  { %v636_v0 = vld [vmem:[#allocation9] sm:$0x3]  ;;  %vm204_vm0 = vcmask 74753   ;;  %vm182_vm1 = vcmask 73728   ;;  %v131_v7 = vld [vmem:[#allocation2 + $0x8] sm:$0xff]  ;;  %v132_v8 = vld [vmem:[#allocation7] sm:$0xff]  ;;  %v180_v37 = vlaneseq }
  0x23   :  { %v205_v1 = vsel %vm204_vm0, %v636_v0, -inf  ;;  %v183_v2 = vsel %vm182_vm1, %v636_v0, -inf  ;;  %v239_v3 = vld [vmem:[%s673_s6] sm:$0x3]  ;;  %v133_v9 = vld [vmem:[#allocation7 + $0x8] sm:$0xff]  ;;  %v157_v25 = vld [vmem:[#allocation11] sm:$0xff] }
  0x24   :  { %206 = vmax.xlane.f32.xlu0 %v205_v1  ;;  %v244_v4 = vsub.f32 0.0, %v239_v3  ;;  %v130_v6 = vld [vmem:[#allocation2] sm:$0xff]  ;;  %v135_v11 = vsub.f32 %v131_v7, %v133_v9  ;;  %v158_v26 = vld [vmem:[#allocation13] sm:$0xff]  ;;  %vm260_vm3 = vcmask 58368   ;;  %s195_s19 = sld [smem:[#allocation10]]  ;;  %v181_v38 = vand.u32 127, %v180_v37 }
  0x25   :  { %v134_v10 = vsub.f32 %v130_v6, %v132_v8  ;;  %v240_v23 = vld [vmem:[%s674_s7] sm:$0x3]  ;;  %v159_v30 = vsub.f32 %v157_v25, %v158_v26  ;;  %s327_s7 = sld [smem:[#allocation10 + $0x1]]  ;;  %s559_s20 = smov 0.0   ;;  %v560_v55 = vmov 2048.0   ;;  %v561_v61 = vmov 512.0  }
  0x26   :  { %v245_v5 = vadd.f32 1.0, %v244_v4  ;;  %v248_v13 = vmul.f32 -0.5, %v244_v4  ;;  %v137_v14 = vmul.f32 %v135_v11, %v135_v11  ;;  %v251_v18 = vand.u32 2147483647, %v244_v4  ;;  %302 = sst [smem:[#allocation15 + $0x5]] %s559_s20  ;;  %s312_s16 = sshll.u32 %s676_s9, 4  ;;  %s313_s16 = int_to_ptr.hbm [resolvable:$true] %s312_s16 }
  0x27   :  { %v136_v12 = vmul.f32 %v134_v10, %v134_v10  ;;  %v256_v29 = vsub.f32 1.0, %v240_v23  ;;  %v160_v33 = vmul.f32 %v159_v30, %v159_v30  ;;  %304 = sst [smem:[#allocation15 + $0x6]] %s559_s20  ;;  %s564_s18 = smov [#allocation15]  }
  0x28   :  { %362 = vlog2.f32 %v245_v5  ;;  %v249_v15 = vadd.f32 1.0, %v248_v13  ;;  %vm252_vm2 = vcmp.lt.f32.partialorder %v251_v18, 0.0004427343  ;;  %306 = sst [smem:[#allocation15 + $0x7]] %s559_s20 }
  0x29   :  { %364 = vlog2.f32 %v239_v3  ;;  %v138_v17 = vadd.f32 %v137_v14, %v136_v12  ;;  %s280_s26 = sld [smem:[#allocation14]] }
  0x2a   :  { %v250_v21 = vmul.f32 %v249_v15, %v244_v4  ;;  %v196_v39 = vstv %s195_s19  ;;  %s328_s27 = sld [smem:[#allocation14 + $0x1]] }
  0x2b   :  { %139 = vadd.xlane.f32.xlu2 %v138_v17  ;;  %vm197_vm4 = vcmp.eq.s32.totalorder %v181_v38, %v196_v39  ;;  %v218_v50 = vstv %s327_s7  ;;  %s329_s4 = sld [smem:[#allocation14 + $0x2]] }
  0x2c   :  { %184 = vmax.xlane.f32.xlu0 %v183_v2  ;;  %v198_v40 = vsel %vm197_vm4, %v636_v0, 0.0  ;;  %vm219_vm5 = vcmp.eq.s32.totalorder %v181_v38, %v218_v50  ;;  %s330_s29 = sld [smem:[#allocation14 + $0x3]] }
  0x2d   :  { %v199_v41 = vsel %vm182_vm1, %v198_v40, 0.0  ;;  %v220_v53 = vsel %vm219_vm5, %v636_v0, 0.0 }
  0x2e   :  { %v363_v16 = vpop.eup %362  ;;  %v221_v54 = vsel %vm204_vm0, %v220_v53, 0.0 }
  0x2f   :  { %v365_v19 = vpop.eup %364  ;;  %v247_v20 = vmul.f32 0.6931472, %v363_v16 }
  0x30   :  { %v242_v22 = vmul.f32 0.6931472, %v365_v19  ;;  %v562_v19 = vmov 2.0  }
  0x31   :  { %v253_v24 = vsel %vm252_vm2, %v250_v21, %v247_v20  ;;  %v563_v20 = vmov 16.0  }
  0x32   :  { %v243_v27 = vmax.f32 %v242_v22, -100.0  ;;  %v254_v28 = vmax.f32 %v253_v24, -100.0 }
  0x33   :  { %161 = vadd.xlane.f32.xlu2 %v160_v33 }
  0x34   :  { %v255_v31 = vmul.f32 %v243_v27, %v240_v23  ;;  %v257_v32 = vmul.f32 %v256_v29, %v254_v28 }
  0x36   :  { %v258_v34 = vadd.f32 %v257_v32, %v255_v31 }
  0x38   :  { %v259_v35 = vsub.f32 0.0, %v258_v34 }
  0x3a   :  { %v261_v36 = vsel %vm260_vm3, %v259_v35, 0.0 }
  0x3b   :  { %262 = vadd.xlane.f32.xlu0 %v261_v36  ;;  %200 = vadd.xlane.f32.xlu2 %v199_v41 }
  0x97   :  { %v650_v42 = vpop.xlane.xlu0 %206 }
  0x98   :  { %v208_v43 = vsub.f32 %v636_v0, %v650_v42 }
  0x9a   :  { %v209_v44 = vmul.f32 1.442695, %v208_v43 }
  0x9c   :  { %366 = vpow2.f32 %v209_v44 }
  0x9e   :  { %v140_v56 = vpop.xlane.xlu2 %139 }
  0x9f   :  { %v654_v45 = vpop.xlane.xlu0 %184  ;;  %v141_v57 = vrot.slane %v140_v56, 4 }
  0xa0   :  { %v186_v46 = vsub.f32 %v636_v0, %v654_v45 }
  0xa1   :  { %v142_v59 = vadd.f32 %v141_v57, %v140_v56 }
  0xa2   :  { %v367_v47 = vpop.eup %366  ;;  %v187_v48 = vmul.f32 1.442695, %v186_v46 }
  0xa3   :  { %v211_v49 = vsel %vm204_vm0, %v367_v47, 0.0  ;;  %v143_v62 = vrot.slane %v142_v59, 2 }
  0xa4   :  { %368 = vpow2.f32 %v187_v48  ;;  %212 = vadd.xlane.f32.xlu1 %v211_v49 }
  0xa5   :  { %370 = vrcp.f32 %v560_v55  ;;  %v144_v1 = vadd.f32 %v143_v62, %v142_v59 }
  0xa6   :  { %372 = vrcp.f32 %v561_v61  ;;  %v162_v2 = vpop.xlane.xlu2 %161 }
  0xa7   :  { %v163_v3 = vrot.slane %v162_v2, 4  ;;  %v145_v4 = vrot.slane %v144_v1, 1  ;;  %374 = vrcp.f32 %v562_v19 }
  0xa8   :  { %376 = vrcp.f32 %v563_v20 }
  0xa9   :  { %v164_v7 = vadd.f32 %v163_v3, %v162_v2  ;;  %v146_v8 = vadd.f32 %v145_v4, %v144_v1 }
  0xaa   :  { %v369_v51 = vpop.eup %368 }
  0xab   :  { %v189_v52 = vsel %vm182_vm1, %v369_v51, 0.0  ;;  %v371_v58 = vpop.eup %370  ;;  %v165_v11 = vrot.slane %v164_v7, 2  ;;  %331 = vpush %v146_v8 }
  0xac   :  { %190 = vadd.xlane.f32.xlu1 %v189_v52  ;;  %v149_v60 = vmul.f32 2048.0, %v371_v58  ;;  %v373_v6 = vpop.eup %372  ;;  %vm153_vm6 = vweird.f32 %v371_v58 }
  0xad   :  { %v171_v10 = vmul.f32 512.0, %v373_v6  ;;  %v166_v13 = vadd.f32 %v165_v11, %v164_v7  ;;  %vm175_vm7 = vweird.f32 %v373_v6  ;;  %v375_v23 = vpop.eup %374 }
  0xae   :  { %v150_v63 = vsub.f32 1.0, %v149_v60  ;;  %v263_v22 = vpop.xlane.xlu0 %262  ;;  %v377_v25 = vpop.eup %376  ;;  %v231_v26 = vmul.f32 2.0, %v375_v23  ;;  %vm235_vm8 = vweird.f32 %v375_v23 }
  0xaf   :  { %v172_v12 = vsub.f32 1.0, %v171_v10  ;;  %v167_v15 = vrot.slane %v166_v13, 1  ;;  %v264_v24 = vrot.slane %v263_v22, 4  ;;  %v272_v30 = vmul.f32 16.0, %v377_v25  ;;  %v201_v44 = vpop.xlane.xlu2 %200 }
  0xb0   :  { %v151_v0 = vmul.f32 %v371_v58, %v150_v63  ;;  %v232_v31 = vsub.f32 1.0, %v231_v26  ;;  %vm276_vm9 = vweird.f32 %v377_v25 }
  0xb1   :  { %v173_v14 = vmul.f32 %v373_v6, %v172_v12  ;;  %v168_v17 = vadd.f32 %v167_v15, %v166_v13  ;;  %v265_v29 = vadd.f32 %v264_v24, %v263_v22  ;;  %v273_v34 = vsub.f32 1.0, %v272_v30 }
  0xb2   :  { %v152_v5 = vadd.f32 %v371_v58, %v151_v0  ;;  %v233_v35 = vmul.f32 %v375_v23, %v232_v31 }
  0xb3   :  { %v174_v16 = vadd.f32 %v373_v6, %v173_v14  ;;  %v266_v33 = vrot.slane %v265_v29, 2  ;;  %v274_v41 = vmul.f32 %v377_v25, %v273_v34 }
  0xb4   :  { %222 = vadd.xlane.f32.xlu1 %v221_v54  ;;  %v154_v9 = vsel %vm153_vm6, %v371_v58, %v152_v5  ;;  %v234_v47 = vadd.f32 %v375_v23, %v233_v35 }
  0xb5   :  { %333 = vpush %v154_v9  ;;  %v176_v18 = vsel %vm175_vm7, %v373_v6, %v174_v16  ;;  %v267_v39 = vadd.f32 %v266_v33, %v265_v29  ;;  %v275_v51 = vadd.f32 %v377_v25, %v274_v41 }
  0xb6   :  { %335 = vpush %v168_v17  ;;  %v236_v53 = vsel %vm235_vm8, %v375_v23, %v234_v47 }
  0xb7   :  { %337 = vpush %v176_v18  ;;  %v268_v50 = vrot.slane %v267_v39, 1 }
  0xb9   :  { %v269_v54 = vadd.f32 %v268_v50, %v267_v39 }
  0xdc   :  { %s332_s21 = spop %331 }
  0xe6   :  { %s334_s22 = spop %333 }
  0xe7   :  { %s156_s23 = smul.f32 %s334_s22, %s332_s21  ;;  %s336_s1 = spop %335 }
  0xe8   :  { %s338_s24 = spop %337 }
  0xe9   :  { %292 = sst [smem:[#allocation15]] %s156_s23  ;;  %s178_s25 = smul.f32 %s338_s24, %s336_s1 }
  0xea   :  { %s281_s11 = smul.f32 %s280_s26, %s156_s23 }
  0xeb   :  { %296 = sst [smem:[#allocation15 + $0x2]] %s178_s25  ;;  %s286_s17 = smul.f32 %s329_s4, %s178_s25 }
 0x117   :  { %v213_v21 = vpop.xlane.xlu1 %212 }
 0x118   :  { %378 = vlog2.f32 %v213_v21 }
 0x11e   :  { %v379_v27 = vpop.eup %378 }
 0x11f   :  { %v191_v28 = vpop.xlane.xlu1 %190  ;;  %v215_v32 = vmul.f32 0.6931472, %v379_v27 }
 0x120   :  { %380 = vlog2.f32 %v191_v28 }
 0x121   :  { %v216_v37 = vadd.f32 %v215_v32, %v650_v42  ;;  %v277_v42 = vsel %vm276_vm9, %v377_v25, %v275_v51 }
 0x126   :  { %v381_v36 = vpop.eup %380 }
 0x127   :  { %v193_v38 = vmul.f32 0.6931472, %v381_v36  ;;  %v223_v40 = vpop.xlane.xlu1 %222 }
 0x128   :  { %v224_v43 = vsub.f32 %v216_v37, %v223_v40 }
 0x129   :  { %v194_v46 = vadd.f32 %v193_v38, %v654_v45 }
 0x12a   :  { %v226_v48 = vrot.slane %v224_v43, 1 }
 0x12b   :  { %v202_v49 = vsub.f32 %v194_v46, %v201_v44 }
 0x12d   :  { %v228_v52 = vadd.f32 %v226_v48, %v202_v49 }
 0x12f   :  { %339 = vpush %v228_v52 }
 0x130   :  { %341 = vpush %v236_v53 }
 0x131   :  { %343 = vpush %v269_v54 }
 0x132   :  { %345 = vpush %v277_v42 }
 0x160   :  { %s340_s28 = spop %339 }
 0x161   :  { %s342_s30 = spop %341 }
 0x162   :  { %s238_s10 = smul.f32 %s342_s30, %s340_s28  ;;  %s344_s0 = spop %343 }
 0x163   :  { %s346_s12 = spop %345 }
 0x164   :  { %s283_s13 = smul.f32 %s328_s27, %s238_s10  ;;  %294 = sst [smem:[#allocation15 + $0x1]] %s238_s10 }
 0x165   :  { %s279_s2 = smul.f32 %s346_s12, %s344_s0 }
 0x166   :  { %s284_s3 = sadd.f32 %s283_s13, %s281_s11 }
 0x167   :  { %298 = sst [smem:[#allocation15 + $0x3]] %s279_s2  ;;  %s289_s8 = smul.f32 %s330_s29, %s279_s2 }
 0x168   :  { %s287_s5 = sadd.f32 %s286_s17, %s284_s3 }
 0x16a   :  { %s290_s6 = sadd.f32 %s289_s8, %s287_s5 }
 0x16c   :  { %300 = sst [smem:[#allocation15 + $0x4]] %s290_s6 }
 0x16d   :  { %315 = dma.smem_to_hbm %s564_s18, 16, %s313_s16, [#allocation5]  }
 0x16e   :  { %548 = dma.done.wait [#allocation5], 16  }
 0x16f   :  { %549 = vsyncadd [#allocation5], 4294967280 }
 0x170   :  { %320 = sfence }
 0x171   :  { %321 = vsyncpa [#allocation3], 1 }
 0x172   :  { %322 = vsyncpa [#allocation8], 1 }
 0x173   :  { %323 = vsyncpa [#allocation12], 1 }
 0x174   :  { %324 = vsyncpa [#allocation4], 1 }
 0x175   :  { %325 = vsyncpa [#allocation5], 1 }
 0x176   :  { %326 = vsyncpa [#allocation6], 1 }

</bundles_post_ra>
